<compile_context>
chip_gen: v7x
topology: tpu7x:2x2x1
jax: 0.10.0
libtpu: 0.0.40
codegen_flags: <defaults>
</compile_context>

<pallas_src>
import math

import jax
import jax.numpy as jnp
from jax.experimental import pallas as pl
from jax.experimental.pallas import tpu as pltpu

_LANE = 128


def _is_v7x():
    try:
        kind = jax.devices()[0].device_kind.lower()
        return ("v7" in kind) or ("tpu7" in kind)
    except Exception:
        return False


_IS_V7X = _is_v7x()


def _symlog_kernel(x_ref, scale_ref, bias_ref, o_ref):
    # sign(x) * log1p(|x|) * scale + bias, with the sign restored via a
    # bit trick (AND the sign bit, OR it into the log result): log1p on the EUP,
    # cheap bitwise ops + one mul + one add on the VALU.
    x = x_ref[...].astype(jnp.float32)
    mag = jnp.log1p(jnp.abs(x))
    sign_bits = pltpu.bitcast(x, jnp.uint32) & jnp.uint32(0x80000000)
    y = pltpu.bitcast(pltpu.bitcast(mag, jnp.uint32) | sign_bits, jnp.float32)
    s = scale_ref[...].astype(jnp.float32)
    b = bias_ref[...].astype(jnp.float32)
    o_ref[...] = (y * s + b).astype(o_ref.dtype)


def _round_up(a, b):
    return -(-a // b) * b


def _choose_tile_rows(m, d, itemsize):
    """Memory-bound sweet-spot blocks (multiple of 8 sublanes): ~2 MiB on
    v5e/v6e, ~8 MiB on v7x (3.2 TB/s HBM, fixed ~0.35 us per-step overhead).
    On v7x also guarantee >= 2 grid steps so both TensorCores get work."""
    target_bytes = (8 << 20) if _IS_V7X else (2 << 20)
    rows = (target_bytes // (itemsize * d)) // 8 * 8
    rows = max(8, rows)
    rows = min(rows, _round_up(m, 8))
    if _IS_V7X and m > 8:
        rows = min(rows, max(8, _round_up(-(-m // 2), 8)))
    return int(rows)


def _symlog_2d(x, scale, bias):
    """x: (M, D); scale, bias: (D,). Returns (M, D). No wrapper-side pad/slice:
    the ragged last block is handled by Pallas (masked writes)."""
    m, d = x.shape
    itemsize = jnp.dtype(x.dtype).itemsize
    p_itemsize = jnp.dtype(scale.dtype).itemsize
    tile_rows = _choose_tile_rows(m, d, itemsize)
    grid = pl.cdiv(m, tile_rows)

    scale2d = scale.reshape(1, d)
    bias2d = bias.reshape(1, d)

    block_bytes = tile_rows * d * itemsize
    # 2x double-buffered input + 2x double-buffered output + params + slack,
    # capped to leave Mosaic internal-scratch headroom (64 MiB physical on v7x).
    vmem_limit = 4 * block_bytes + 4 * d * max(itemsize, p_itemsize) + (2 << 20)
    vmem_cap = (48 << 20) if _IS_V7X else (100 << 20)
    vmem_limit = int(min(max(32 << 20, vmem_limit), vmem_cap))

    cost = pl.CostEstimate(
        flops=3 * m * d,
        transcendentals=m * d,
        bytes_accessed=2 * m * d * itemsize + 2 * d * p_itemsize,
    )

    # Note: for extremely large D (tile_rows*D*4 >> VMEM budget) a second grid
    # axis over D in multiples of 128 would be the next step; not needed here.
    return pl.pallas_call(
        _symlog_kernel,
        out_shape=jax.ShapeDtypeStruct((m, d), x.dtype),
        grid_spec=pltpu.PrefetchScalarGridSpec(
            num_scalar_prefetch=0,
            grid=(grid,),
            in_specs=[
                pl.BlockSpec((tile_rows, d), lambda i: (i, 0)),
                pl.BlockSpec((1, d), lambda i: (0, 0)),   # resident across steps
                pl.BlockSpec((1, d), lambda i: (0, 0)),
            ],
            out_specs=pl.BlockSpec((tile_rows, d), lambda i: (i, 0)),
        ),
        compiler_params=pltpu.CompilerParams(
            dimension_semantics=("parallel",),
            vmem_limit_bytes=vmem_limit,
        ),
        cost_estimate=cost,
    )(x, scale2d, bias2d)


def _symlog_jax(x, scale, bias):
    # Tiny fallback for < pack leftover rows (negligible work).
    return jnp.sign(x) * jnp.log1p(jnp.abs(x)) * scale + bias


def symlog_module(x, scale, bias):
    """SymLog forward matching the PyTorch module, for x of shape (..., dim)."""
    orig_shape = x.shape
    d = orig_shape[-1]
    x2d = x.reshape(-1, d)
    m = x2d.shape[0]

    if d % _LANE == 0:
        # Already lane-dense: direct path, ragged M handled inside the kernel.
        out = _symlog_2d(x2d, scale, bias)
    else:
        # Lane-dense layout plumbing for ANY d not a multiple of 128: pack `pack`
        # consecutive rows into one lane row of width l = lcm(d, 128) so loads and
        # stores are unmasked full-lane vld/vst; per-channel semantics preserved
        # by tiling scale/bias, not changing math.
        l = math.lcm(d, _LANE)
        pack = l // d
        m_main = (m // pack) * pack
        rem = m - m_main

        if m_main == 0:
            # Fewer than `pack` rows total: run the direct (masked-store) kernel.
            out = _symlog_2d(x2d, scale, bias)
        else:
            scale_p = jnp.tile(scale, pack)
            bias_p = jnp.tile(bias, pack)
            if rem == 0:
                # Zero-copy contiguous reshape, no pad, no slice.
                out = _symlog_2d(
                    x2d.reshape(m // pack, l), scale_p, bias_p
                ).reshape(m, d)
            else:
                # Pack-aligned prefix through the kernel; tiny (< pack rows)
                # leftover via pure JAX instead of a whole-array pad + slice.
                main = _symlog_2d(
                    x2d[:m_main].reshape(m_main // pack, l), scale_p, bias_p
                ).reshape(m_main, d)
                tail = _symlog_jax(x2d[m_main:], scale, bias)
                out = jnp.concatenate([main, tail], axis=0)

    return out.reshape(orig_shape)


def _ref_symlog(x, scale, bias):
    return jnp.sign(x) * jnp.log(jnp.abs(x) + 1.0) * scale + bias


if __name__ == "__main__":
    key = jax.random.PRNGKey(0)

    # Shapes exercise: packed path with rem==0 (D=32), packed path with a ragged
    # remainder (D=48, 15 rows -> pack=8), direct 128-multiple path with ragged M
    # (D=256), packed path for D>=128 non-multiple (D=192), and the tiny
    # m < pack direct fallback (D=48, 2 rows).
    for shape in [(2, 8, 32), (3, 5, 48), (2, 7, 256), (2, 6, 192), (1, 2, 48)]:
        dim = shape[-1]
        k1, k2, k3, key = jax.random.split(key, 4)
        x = jax.random.normal(k1, shape, dtype=jnp.float32) * 3.0

        # Parameter init matching nn.Parameter(torch.ones/zeros(dim)).
        scale = jnp.ones((dim,), dtype=jnp.float32)
        bias = jnp.zeros((dim,), dtype=jnp.float32)
        out = jax.block_until_ready(symlog_module(x, scale, bias))
        assert jnp.allclose(out, _ref_symlog(x, scale, bias), atol=1e-5, rtol=1e-5)

        # Non-trivial per-channel params to exercise the broadcast path.
        scale = jax.random.normal(k2, (dim,), dtype=jnp.float32)
        bias = jax.random.normal(k3, (dim,), dtype=jnp.float32)
        out = jax.block_until_ready(symlog_module(x, scale, bias))
        assert jnp.allclose(out, _ref_symlog(x, scale, bias), atol=1e-5, rtol=1e-5)

    print("KERNEL_OK")
</pallas_src>

<mosaic_0001>
module attributes {stable_mosaic.version = 11 : i64} {
  func.func @_symlog_kernel(%arg0: i32, %arg1: memref<8x128xf32, #tpu.memory_space<vmem>>, %arg2: memref<1x128xf32, #tpu.memory_space<vmem>>, %arg3: memref<1x128xf32, #tpu.memory_space<vmem>>, %arg4: memref<8x128xf32, #tpu.memory_space<vmem>>) attributes {dimension_semantics = [#tpu.dimension_semantics<parallel>], iteration_bounds = array<i64: 1>, scalar_prefetch = 0 : i64, scratch_operands = 0 : i64, tpu.core_type = #tpu.core_type<tc>, window_params = [{transform_indices = @transform_0, window_bounds = array<i64: 8, 128>}, {pipeline_mode = #tpu.pipeline_mode<synchronous>, transform_indices = @transform_1, window_bounds = array<i64: 1, 128>}, {pipeline_mode = #tpu.pipeline_mode<synchronous>, transform_indices = @transform_2, window_bounds = array<i64: 1, 128>}, {transform_indices = @transform_3, window_bounds = array<i64: 8, 128>}]} {
    %c0 = arith.constant 0 : index
    %c0_0 = arith.constant 0 : index
    %0 = vector.load %arg1[%c0, %c0_0] : memref<8x128xf32, #tpu.memory_space<vmem>>, vector<8x128xf32>
    %1 = math.absf %0 : vector<8x128xf32>
    %2 = math.log1p %1 : vector<8x128xf32>
    %3 = tpu.bitcast %0 : vector<8x128xf32> -> vector<8x128xi32>
    %c-2147483648_i32 = arith.constant -2147483648 : i32
    %4 = vector.broadcast %c-2147483648_i32 : i32 to vector<8x128xi32>
    %5 = arith.andi %3, %4 : vector<8x128xi32>
    %6 = tpu.bitcast %2 : vector<8x128xf32> -> vector<8x128xi32>
    %7 = arith.ori %6, %5 : vector<8x128xi32>
    %8 = tpu.bitcast %7 : vector<8x128xi32> -> vector<8x128xf32>
    %c0_1 = arith.constant 0 : index
    %c0_2 = arith.constant 0 : index
    %9 = vector.load %arg2[%c0_1, %c0_2] : memref<1x128xf32, #tpu.memory_space<vmem>>, vector<1x128xf32>
    %c0_3 = arith.constant 0 : index
    %c0_4 = arith.constant 0 : index
    %10 = vector.load %arg3[%c0_3, %c0_4] : memref<1x128xf32, #tpu.memory_space<vmem>>, vector<1x128xf32>
    %11 = vector.broadcast %9 : vector<1x128xf32> to vector<8x128xf32>
    %12 = arith.mulf %8, %11 : vector<8x128xf32>
    %13 = vector.broadcast %10 : vector<1x128xf32> to vector<8x128xf32>
    %14 = arith.addf %12, %13 : vector<8x128xf32>
    %c0_5 = arith.constant 0 : index
    %c0_6 = arith.constant 0 : index
    %15 = vector.load %arg4[%c0_5, %c0_6] : memref<8x128xf32, #tpu.memory_space<vmem>>, vector<8x128xf32>
    tpu.vector_store %arg4[%c0_5, %c0_6], %14 {strides = array<i32>} : memref<8x128xf32, #tpu.memory_space<vmem>>, vector<8x128xf32>,
    return
  }
  func.func @transform_0(%arg0: i32) -> (i32, i32) {
    %c0_i32 = arith.constant 0 : i32
    %c0_i32_0 = arith.constant 0 : i32
    return %arg0, %c0_i32 : i32, i32
  }
  func.func @transform_1(%arg0: i32) -> (i32, i32) {
    %c0_i32 = arith.constant 0 : i32
    %c0_i32_0 = arith.constant 0 : i32
    %c0_i32_1 = arith.constant 0 : i32
    return %c0_i32, %c0_i32_0 : i32, i32
  }
  func.func @transform_2(%arg0: i32) -> (i32, i32) {
    %c0_i32 = arith.constant 0 : i32
    %c0_i32_0 = arith.constant 0 : i32
    %c0_i32_1 = arith.constant 0 : i32
    return %c0_i32, %c0_i32_0 : i32, i32
  }
  func.func @transform_3(%arg0: i32) -> (i32, i32) {
    %c0_i32 = arith.constant 0 : i32
    %c0_i32_0 = arith.constant 0 : i32
    return %arg0, %c0_i32 : i32, i32
  }
}

</mosaic_0001>

<bundles_post_ra>
// kernel: tpu_custom_call.1
= control target key start
LH: loop header
LB: loop body
LE: loop exit
PB: predicated region body
PF: predicated region fallthrough
CT: control target
= control target key end

     0   :  { %8 = vsyncpa [#allocation3], 0  ;;  %s195_s0 = inlined_call_operand.hbm [shape: f32[4,128], index: 0, kind: input, shape index: {}]   ;;  %s196_s1 = inlined_call_operand.vmem [shape: f32[1,128], index: 1, kind: input, shape index: {}]   ;;  %s197_s2 = inlined_call_operand.vmem [shape: f32[1,128], index: 2, kind: input, shape index: {}]   ;;  %s198_s3 = inlined_call_operand.hbm [shape: f32[4,128], index: 3, kind: output, shape index: {}]  }
   0x1   :  { %9 = vsyncpa [#allocation4], 0 }
   0x2   :  { %14 = vsyncadd [#allocation3], 64  ;;  %s135_s12 = smov [#allocation2]   ;;  %s87_s16 = scalar_lea.hbm %s195_s0, 64 }
   0x3   :  { %s15_s13 = sshll.u32 %s135_s12, 4  ;;  %p88_p0 = scmp.ne.s32.totalorder %s195_s0, %s87_s16  ;;  %s16_s13 = int_to_ptr.vmem [resolvable:$true] %s15_s13 }
   0x4   :  { %p91_p1 = scmp.lt.u32.totalorder %s87_s16, %s195_s0 }
   0x6   :  { %p93_p2 = pnand %p91_p1, %p88_p0 }
   0x8   :  { %96 = shalt.err (!%p93_p2)
}
   0x9   :  { %s97_s21 = scalar_lea.vmem %s16_s13, 64  ;;  %s101_s22 = scalar_lea.vmem %s16_s13, 128 }
   0xa   :  { %p98_p3 = scmp.ne.s32.totalorder %s16_s13, %s97_s21  ;;  %p102_p4 = scmp.lt.s32.totalorder %s16_s13, %s16_s13 }
   0xb   :  { %p103_p5 = scmp.lt.s32.totalorder %s101_s22, %s97_s21 }
   0xd   :  { %p104_p6 = por %p103_p5, %p102_p4 }
   0xf   :  { %p105_p7 = pnand %p104_p6, %p98_p3 }
  0x11   :  { %108 = shalt.err (!%p105_p7)
}
  0x12   :  { %s136_s23 = smov 64   ;;  %s137_s24 = smov 4  }
  0x13   :  { %21 = dma.hbm_to_vmem [thread:$0]  %s195_s0, 64, %s16_s13, [#allocation3], %s136_s23, %s136_s23, %s137_s24  }
  0x14   :  { %131 = dma.done.wait [#allocation3], 128  }
  0x15   :  { %132 = vsyncadd [#allocation3], 4294967168  ;;  %v29_v0 = vld [vmem:[#allocation2] sm:$0xff] }
  0x16   :  { %v30_v1 = vand.u32 2147483647, %v29_v0  ;;  %v41_v7 = vand.u32 2147483648, %v29_v0  ;;  %v79_v10 = vld [vmem:[%s196_s1] ss:$0 sm:$0xff] }
  0x17   :  { %v80_v12 = vld [vmem:[%s197_s2] ss:$0 sm:$0xff] }
  0x18   :  { %v31_v2 = vadd.f32 1.0, %v30_v1  ;;  %v34_v3 = vmul.f32 -0.5, %v30_v1  ;;  %vm38_vm0 = vcmp.lt.f32.partialorder %v30_v1, 0.0004427343 }
  0x1a   :  { %85 = vlog2.f32 %v31_v2  ;;  %v35_v4 = vadd.f32 1.0, %v34_v3 }
  0x1c   :  { %v36_v5 = vmul.f32 %v35_v4, %v30_v1 }
  0x24   :  { %v86_v6 = vpop.eup %85 }
  0x25   :  { %v33_v8 = vmul.f32 0.6931472, %v86_v6 }
  0x27   :  { %v39_v9 = vsel %vm38_vm0, %v36_v5, %v33_v8 }
  0x28   :  { %v43_v11 = vor.u32 %v41_v7, %v39_v9 }
  0x2a   :  { %v53_v13 = vmul.f32 %v79_v10, %v43_v11 }
  0x2c   :  { %v60_v14 = vadd.f32 %v80_v12, %v53_v13 }
  0x2e   :  { %61 = vst [vmem:[#allocation5] sm:$0xff] %v60_v14 }
  0x2f   :  { %66 = vsyncadd [#allocation4], 64  ;;  %s138_s30 = smov [#allocation5]  }
  0x30   :  { %s67_s4 = sshll.u32 %s138_s30, 4  ;;  %s68_s4 = int_to_ptr.vmem [resolvable:$true] %s67_s4 }
  0x31   :  { %s109_s5 = scalar_lea.vmem %s68_s4, 64  ;;  %s113_s6 = scalar_lea.vmem %s68_s4, 128 }
  0x32   :  { %p110_p8 = scmp.ne.s32.totalorder %s68_s4, %s109_s5  ;;  %p114_p9 = scmp.lt.s32.totalorder %s68_s4, %s68_s4 }
  0x33   :  { %p115_p10 = scmp.lt.s32.totalorder %s113_s6, %s109_s5 }
  0x35   :  { %p116_p11 = por %p115_p10, %p114_p9 }
  0x37   :  { %p117_p12 = pnand %p116_p11, %p110_p8 }
  0x39   :  { %120 = shalt.err (!%p117_p12)
}
  0x3a   :  { %s121_s8 = scalar_lea.hbm %s198_s3, 64 }
  0x3b   :  { %p122_p13 = scmp.ne.s32.totalorder %s198_s3, %s121_s8  ;;  %p125_p0 = scmp.lt.u32.totalorder %s121_s8, %s198_s3 }
  0x3d   :  { %p127_p1 = pnand %p125_p0, %p122_p13 }
  0x3f   :  { %130 = shalt.err (!%p127_p1)
}
  0x40   :  { %73 = dma.vmem_to_hbm [thread:$0]  %s68_s4, 64, %s198_s3, [#allocation4], %s136_s23, %s136_s23, %s137_s24  }
  0x41   :  { %133 = dma.done.wait [#allocation4], 128  }
  0x42   :  { %134 = vsyncadd [#allocation4], 4294967168 }
  0x43   :  { %77 = vsyncpa [#allocation3], 1 }
  0x44   :  { %78 = vsyncpa [#allocation4], 1 }

</bundles_post_ra>
